<compile_context>
chip_gen: v5e
topology: v5e:2x2
jax: 0.10.0
libtpu: 0.0.40
codegen_flags: <defaults>
</compile_context>

<pallas_src>
import functools

import jax
import jax.numpy as jnp
from jax.experimental import pallas as pl
from jax.experimental.pallas import tpu as pltpu


def _mlp_kernel(x_ref, w1_ref, b1_ref, w2_ref, b2_ref, w3_ref, b3_ref, o_ref):
    # fc1 + ReLU   (bf16 MXU operands, f32 accumulation, f32 elementwise)
    x = x_ref[...].astype(jnp.bfloat16)
    h1 = jnp.dot(x, w1_ref[...], preferred_element_type=jnp.float32)
    h1 = jnp.maximum(h1 + b1_ref[...], 0.0).astype(jnp.bfloat16)
    # fc2 + ReLU
    h2 = jnp.dot(h1, w2_ref[...], preferred_element_type=jnp.float32)
    h2 = jnp.maximum(h2 + b2_ref[...], 0.0).astype(jnp.bfloat16)
    # fc3 + sigmoid (direct narrow-lane output; no padded columns)
    logits = jnp.dot(h2, w3_ref[...], preferred_element_type=jnp.float32)
    o_ref[...] = jax.nn.sigmoid(logits + b3_ref[...]).astype(o_ref.dtype)


def _round_up(x, m):
    return ((x + m - 1) // m) * m


def prepare_params(params):
    """One-time parameter prep: bf16 MXU-operand weights, f32 biases.

    Do this once when the model is built, NOT per forward call.
    """
    w1, b1, w2, b2, w3, b3 = params
    return (w1.astype(jnp.bfloat16), b1,
            w2.astype(jnp.bfloat16), b2,
            w3.astype(jnp.bfloat16), b3)


@functools.partial(jax.jit, static_argnames=("block_b",))
def mlp_forward(x, prepared, block_b=2048):
    """x: any shape; flattened to (-1, n_feature) like the PyTorch module.

    `prepared` comes from prepare_params(); weights are stored pre-transposed as
    (in_features, out_features) so the kernel computes y = x @ W + b
    (== PyTorch Linear's x @ W.T + b).
    """
    w1, b1, w2, b2, w3, b3 = prepared
    n_feature = w1.shape[0]
    h1_dim = w1.shape[1]
    h2_dim = w2.shape[1]
    n_label = w3.shape[1]

    x2d = x.reshape(-1, n_feature)
    b = x2d.shape[0]

    # Batch tile: as large as possible (amortize ~0.35 us/step overhead).
    # Must be a multiple of 8 unless it equals the full batch dim.
    tb = min(block_b, b)
    if tb != b and tb % 8 != 0:
        tb = _round_up(tb, 8)
    # Megacore (v7x): ensure >=2 grid steps when the batch can be split 8-aligned,
    # so dimension_semantics=("parallel",) actually shards across both TensorCores.
    if b >= 16 and pl.cdiv(b, tb) < 2:
        tb = _round_up(pl.cdiv(b, 2), 8)

    grid = (pl.cdiv(b, tb),)

    flops = 2 * b * (n_feature * h1_dim + h1_dim * h2_dim + h2_dim * n_label)
    bytes_accessed = (
        b * (n_feature + n_label) * 4                                  # x in, out
        + (n_feature * h1_dim + h1_dim * h2_dim + h2_dim * n_label) * 2  # bf16 weights
        + (h1_dim + h2_dim + n_label) * 4)                             # f32 biases

    out = pl.pallas_call(
        _mlp_kernel,
        out_shape=jax.ShapeDtypeStruct((b, n_label), jnp.float32),
        grid_spec=pltpu.PrefetchScalarGridSpec(
            num_scalar_prefetch=0,
            grid=grid,
            in_specs=[
                pl.BlockSpec((tb, n_feature), lambda i: (i, 0)),       # x tile
                pl.BlockSpec((n_feature, h1_dim), lambda i: (0, 0)),   # W1 (bf16)
                pl.BlockSpec((1, h1_dim), lambda i: (0, 0)),           # b1 (f32)
                pl.BlockSpec((h1_dim, h2_dim), lambda i: (0, 0)),      # W2 (bf16)
                pl.BlockSpec((1, h2_dim), lambda i: (0, 0)),           # b2 (f32)
                pl.BlockSpec((h2_dim, n_label), lambda i: (0, 0)),     # W3 (bf16)
                pl.BlockSpec((1, n_label), lambda i: (0, 0)),          # b3 (f32)
            ],
            out_specs=pl.BlockSpec((tb, n_label), lambda i: (i, 0)),
        ),
        compiler_params=pltpu.CompilerParams(
            dimension_semantics=("parallel",),
            vmem_limit_bytes=48 * 1024 * 1024,
        ),
        cost_estimate=pl.CostEstimate(
            flops=flops,
            transcendentals=b * n_label,
            bytes_accessed=bytes_accessed,
        ),
    )(x2d, w1, b1, w2, b2, w3, b3)

    return out


def init_params(key, n_feature, n_label):
    """Deterministic init mirroring torch.nn.Linear default (uniform +-1/sqrt(fan_in)).
    Weights stored transposed: (in_features, out_features)."""
    dims = [(n_feature, 512), (512, 128), (128, n_label)]
    params = []
    for (fan_in, fan_out) in dims:
        key, kw, kb = jax.random.split(key, 3)
        bound = 1.0 / (fan_in ** 0.5)
        w = jax.random.uniform(kw, (fan_in, fan_out), jnp.float32, -bound, bound)
        b = jax.random.uniform(kb, (1, fan_out), jnp.float32, -bound, bound)
        params += [w, b]
    return tuple(params)


def mlp_reference_f32(x, params):
    w1, b1, w2, b2, w3, b3 = params
    x2d = x.reshape(-1, w1.shape[0])
    h1 = jax.nn.relu(x2d @ w1 + b1)
    h2 = jax.nn.relu(h1 @ w2 + b2)
    return jax.nn.sigmoid(h2 @ w3 + b3)


def mlp_reference_bf16(x, params):
    """Mirrors the kernel's numerics (bf16 MXU operands, f32 accumulation)."""
    w1, b1, w2, b2, w3, b3 = params
    x2d = x.reshape(-1, w1.shape[0]).astype(jnp.bfloat16)
    h1 = jnp.dot(x2d, w1.astype(jnp.bfloat16), preferred_element_type=jnp.float32)
    h1 = jnp.maximum(h1 + b1, 0.0).astype(jnp.bfloat16)
    h2 = jnp.dot(h1, w2.astype(jnp.bfloat16), preferred_element_type=jnp.float32)
    h2 = jnp.maximum(h2 + b2, 0.0).astype(jnp.bfloat16)
    logits = jnp.dot(h2, w3.astype(jnp.bfloat16), preferred_element_type=jnp.float32)
    return jax.nn.sigmoid(logits + b3)


if __name__ == "__main__":
    n_feature = 32
    n_label = 16
    batch = 8

    key = jax.random.PRNGKey(0)
    key, kx = jax.random.split(key)
    x = jax.random.normal(kx, (batch, n_feature), jnp.float32)
    params = init_params(key, n_feature, n_label)

    prepared = prepare_params(params)          # one-time weight prep (bf16)
    out = mlp_forward(x, prepared)
    out = jax.block_until_ready(out)

    assert out.shape == (batch, n_label), out.shape

    # Exact-ish check against a reference that mirrors the kernel numerics.
    ref_bf16 = mlp_reference_bf16(x, params)
    err_bf16 = float(jnp.max(jnp.abs(out - ref_bf16)))
    assert err_bf16 < 1e-5, err_bf16

    # Loose semantic check against the full-f32 PyTorch-equivalent forward.
    ref_f32 = mlp_reference_f32(x, params)
    err_f32 = float(jnp.max(jnp.abs(out - ref_f32)))
    assert err_f32 < 5e-2, err_f32

    # Also exercise a larger, ragged, multi-step-grid batch (megacore path).
    key, kx2 = jax.random.split(key)
    x_big = jax.random.normal(kx2, (1000, n_feature), jnp.float32)
    out_big = jax.block_until_ready(mlp_forward(x_big, prepared))
    ref_big = mlp_reference_bf16(x_big, params)
    err_big = float(jnp.max(jnp.abs(out_big - ref_big)))
    assert out_big.shape == (1000, n_label), out_big.shape
    assert err_big < 1e-5, err_big

    print("KERNEL_OK")
</pallas_src>

<mosaic_0001>
module attributes {stable_mosaic.version = 11 : i64} {
  func.func @_mlp_kernel(%arg0: i32, %arg1: memref<8x32xf32, #tpu.memory_space<vmem>>, %arg2: memref<32x512xbf16, #tpu.memory_space<vmem>>, %arg3: memref<1x512xf32, #tpu.memory_space<vmem>>, %arg4: memref<512x128xbf16, #tpu.memory_space<vmem>>, %arg5: memref<1x128xf32, #tpu.memory_space<vmem>>, %arg6: memref<128x16xbf16, #tpu.memory_space<vmem>>, %arg7: memref<1x16xf32, #tpu.memory_space<vmem>>, %arg8: memref<8x16xf32, #tpu.memory_space<vmem>>) attributes {dimension_semantics = [#tpu.dimension_semantics<parallel>], iteration_bounds = array<i64: 1>, scalar_prefetch = 0 : i64, scratch_operands = 0 : i64, tpu.core_type = #tpu.core_type<tc>, window_params = [{transform_indices = @transform_0, window_bounds = array<i64: 8, 32>}, {pipeline_mode = #tpu.pipeline_mode<synchronous>, transform_indices = @transform_1, window_bounds = array<i64: 32, 512>}, {pipeline_mode = #tpu.pipeline_mode<synchronous>, transform_indices = @transform_2, window_bounds = array<i64: 1, 512>}, {pipeline_mode = #tpu.pipeline_mode<synchronous>, transform_indices = @transform_3, window_bounds = array<i64: 512, 128>}, {pipeline_mode = #tpu.pipeline_mode<synchronous>, transform_indices = @transform_4, window_bounds = array<i64: 1, 128>}, {pipeline_mode = #tpu.pipeline_mode<synchronous>, transform_indices = @transform_5, window_bounds = array<i64: 128, 16>}, {pipeline_mode = #tpu.pipeline_mode<synchronous>, transform_indices = @transform_6, window_bounds = array<i64: 1, 16>}, {transform_indices = @transform_7, window_bounds = array<i64: 8, 16>}]} {
    %c0 = arith.constant 0 : index
    %c0_0 = arith.constant 0 : index
    %0 = vector.load %arg1[%c0, %c0_0] : memref<8x32xf32, #tpu.memory_space<vmem>>, vector<8x32xf32>
    %1 = arith.truncf %0 : vector<8x32xf32> to vector<8x32xbf16>
    %c0_1 = arith.constant 0 : index
    %c0_2 = arith.constant 0 : index
    %2 = vector.load %arg2[%c0_1, %c0_2] : memref<32x512xbf16, #tpu.memory_space<vmem>>, vector<32x512xbf16>
    %cst = arith.constant dense<0.000000e+00> : vector<8x512xf32>
    %3 = tpu.matmul %1, %2, %cst {dimension_numbers = #tpu.dot_dimension_numbers<[1], [0], [0], [1], [0, 0, 1, 1], [], []>} : vector<8x32xbf16>, vector<32x512xbf16>, vector<8x512xf32> -> vector<8x512xf32>
    %c0_3 = arith.constant 0 : index
    %c0_4 = arith.constant 0 : index
    %4 = vector.load %arg3[%c0_3, %c0_4] : memref<1x512xf32, #tpu.memory_space<vmem>>, vector<1x512xf32>
    %5 = vector.broadcast %4 : vector<1x512xf32> to vector<8x512xf32>
    %6 = arith.addf %3, %5 : vector<8x512xf32>
    %cst_5 = arith.constant 0.000000e+00 : f32
    %7 = vector.broadcast %cst_5 : f32 to vector<8x512xf32>
    %8 = arith.maximumf %6, %7 : vector<8x512xf32>
    %9 = arith.truncf %8 : vector<8x512xf32> to vector<8x512xbf16>
    %c0_6 = arith.constant 0 : index
    %c0_7 = arith.constant 0 : index
    %10 = vector.load %arg4[%c0_6, %c0_7] : memref<512x128xbf16, #tpu.memory_space<vmem>>, vector<512x128xbf16>
    %cst_8 = arith.constant dense<0.000000e+00> : vector<8x128xf32>
    %11 = tpu.matmul %9, %10, %cst_8 {dimension_numbers = #tpu.dot_dimension_numbers<[1], [0], [0], [1], [0, 0, 1, 1], [], []>} : vector<8x512xbf16>, vector<512x128xbf16>, vector<8x128xf32> -> vector<8x128xf32>
    %c0_9 = arith.constant 0 : index
    %c0_10 = arith.constant 0 : index
    %12 = vector.load %arg5[%c0_9, %c0_10] : memref<1x128xf32, #tpu.memory_space<vmem>>, vector<1x128xf32>
    %13 = vector.broadcast %12 : vector<1x128xf32> to vector<8x128xf32>
    %14 = arith.addf %11, %13 : vector<8x128xf32>
    %cst_11 = arith.constant 0.000000e+00 : f32
    %15 = vector.broadcast %cst_11 : f32 to vector<8x128xf32>
    %16 = arith.maximumf %14, %15 : vector<8x128xf32>
    %17 = arith.truncf %16 : vector<8x128xf32> to vector<8x128xbf16>
    %c0_12 = arith.constant 0 : index
    %c0_13 = arith.constant 0 : index
    %18 = vector.load %arg6[%c0_12, %c0_13] : memref<128x16xbf16, #tpu.memory_space<vmem>>, vector<128x16xbf16>
    %cst_14 = arith.constant dense<0.000000e+00> : vector<8x16xf32>
    %19 = tpu.matmul %17, %18, %cst_14 {dimension_numbers = #tpu.dot_dimension_numbers<[1], [0], [0], [1], [0, 0, 1, 1], [], []>} : vector<8x128xbf16>, vector<128x16xbf16>, vector<8x16xf32> -> vector<8x16xf32>
    %c0_15 = arith.constant 0 : index
    %c0_16 = arith.constant 0 : index
    %20 = vector.load %arg7[%c0_15, %c0_16] : memref<1x16xf32, #tpu.memory_space<vmem>>, vector<1x16xf32>
    %21 = vector.broadcast %20 : vector<1x16xf32> to vector<8x16xf32>
    %22 = arith.addf %19, %21 : vector<8x16xf32>
    %23 = arith.negf %22 : vector<8x16xf32>
    %24 = math.exp %23 : vector<8x16xf32>
    %cst_17 = arith.constant 1.000000e+00 : f32
    %25 = vector.broadcast %cst_17 : f32 to vector<8x16xf32>
    %26 = arith.addf %25, %24 : vector<8x16xf32>
    %27 = arith.divf %25, %26 : vector<8x16xf32>
    %c0_18 = arith.constant 0 : index
    %c0_19 = arith.constant 0 : index
    %28 = vector.load %arg8[%c0_18, %c0_19] : memref<8x16xf32, #tpu.memory_space<vmem>>, vector<8x16xf32>
    tpu.vector_store %arg8[%c0_18, %c0_19], %27 {strides = array<i32>} : memref<8x16xf32, #tpu.memory_space<vmem>>, vector<8x16xf32>,
    return
  }
  func.func @transform_0(%arg0: i32) -> (i32, i32) {
    %c0_i32 = arith.constant 0 : i32
    %c0_i32_0 = arith.constant 0 : i32
    return %arg0, %c0_i32 : i32, i32
  }
  func.func @transform_1(%arg0: i32) -> (i32, i32) {
    %c0_i32 = arith.constant 0 : i32
    %c0_i32_0 = arith.constant 0 : i32
    %c0_i32_1 = arith.constant 0 : i32
    return %c0_i32, %c0_i32_0 : i32, i32
  }
  func.func @transform_2(%arg0: i32) -> (i32, i32) {
    %c0_i32 = arith.constant 0 : i32
    %c0_i32_0 = arith.constant 0 : i32
    %c0_i32_1 = arith.constant 0 : i32
    return %c0_i32, %c0_i32_0 : i32, i32
  }
  func.func @transform_3(%arg0: i32) -> (i32, i32) {
    %c0_i32 = arith.constant 0 : i32
    %c0_i32_0 = arith.constant 0 : i32
    %c0_i32_1 = arith.constant 0 : i32
    return %c0_i32, %c0_i32_0 : i32, i32
  }
  func.func @transform_4(%arg0: i32) -> (i32, i32) {
    %c0_i32 = arith.constant 0 : i32
    %c0_i32_0 = arith.constant 0 : i32
    %c0_i32_1 = arith.constant 0 : i32
    return %c0_i32, %c0_i32_0 : i32, i32
  }
  func.func @transform_5(%arg0: i32) -> (i32, i32) {
    %c0_i32 = arith.constant 0 : i32
    %c0_i32_0 = arith.constant 0 : i32
    %c0_i32_1 = arith.constant 0 : i32
    return %c0_i32, %c0_i32_0 : i32, i32
  }
  func.func @transform_6(%arg0: i32) -> (i32, i32) {
    %c0_i32 = arith.constant 0 : i32
    %c0_i32_0 = arith.constant 0 : i32
    %c0_i32_1 = arith.constant 0 : i32
    return %c0_i32, %c0_i32_0 : i32, i32
  }
  func.func @transform_7(%arg0: i32) -> (i32, i32) {
    %c0_i32 = arith.constant 0 : i32
    %c0_i32_0 = arith.constant 0 : i32
    return %arg0, %c0_i32 : i32, i32
  }
}

</mosaic_0001>

<bundles_post_ra>
// kernel: mlp_forward.1
= control target key start
LH: loop header
LB: loop body
LE: loop exit
PB: predicated region body
PF: predicated region fallthrough
CT: control target
= control target key end

     0   :  { %12 = vsyncpa [#allocation3], 0  ;;  %s1089_s0 = inlined_call_operand.vmem [shape: f32[8,32], index: 0, kind: input, shape index: {}]   ;;  %s1090_s1 = inlined_call_operand.vmem [shape: bf16[32,512], index: 1, kind: input, shape index: {}]   ;;  %s1091_s2 = inlined_call_operand.hbm [shape: f32[1,512], index: 2, kind: input, shape index: {}]   ;;  %s1092_s3 = inlined_call_operand.hbm [shape: bf16[512,128], index: 3, kind: input, shape index: {}]   ;;  %s1093_s4 = inlined_call_operand.vmem [shape: f32[1,128], index: 4, kind: input, shape index: {}]   ;;  %s1094_s5 = inlined_call_operand.vmem [shape: bf16[128,16], index: 5, kind: input, shape index: {}]   ;;  %s1095_s6 = inlined_call_operand.vmem [shape: f32[1,16], index: 6, kind: input, shape index: {}]   ;;  %s1096_s7 = inlined_call_operand.hbm [shape: f32[8,16], index: 7, kind: output, shape index: {}]  }
   0x1   :  { %13 = vsyncpa [#allocation6], 0 }
   0x2   :  { %14 = vsyncpa [#allocation4], 0  ;;  %s24_s26 = sshll.u32 %s1091_s2, 4  ;;  %s950_s27 = smov [#allocation2]   ;;  %s25_s26 = int_to_ptr.hbm [resolvable:$true] %s24_s26 }
   0x3   :  { %s26_s28 = sshll.u32 %s950_s27, 4  ;;  %s34_s8 = sshll.u32 %s1092_s3, 4  ;;  %s27_s28 = int_to_ptr.vmem [resolvable:$true] %s26_s28  ;;  %s35_s8 = int_to_ptr.hbm [resolvable:$true] %s34_s8 }
   0x4   :  { %29 = dma.hbm_to_vmem [thread:$0]  %s25_s26, 64, %s27_s28, [#allocation3]  }
   0x5   :  { %s951_s9 = smov [#allocation5]   ;;  %s952_s11 = smov 64  }
   0x6   :  { %s36_s10 = sshll.u32 %s951_s9, 4  ;;  %s953_s12 = smov 4   ;;  %s37_s10 = int_to_ptr.vmem [resolvable:$true] %s36_s10 }
   0x7   :  { %42 = dma.hbm_to_vmem [thread:$0]  %s35_s8, 4096, %s37_s10, [#allocation6], %s952_s11, %s952_s11, %s953_s12  }
   0x8   :  { %944 = dma.done.wait [#allocation3], 64  }
   0x9   :  { %945 = vsyncadd [#allocation3], 4294967232 }
   0xa   :  { %946 = dma.done.wait [#allocation6], 4096  }
   0xb   :  { %947 = vsyncadd [#allocation6], 4294963200  ;;  %v634_v0 = vld [vmem:[%s1090_s1 + $0x20] sm:$0xf]  ;;  %v819_v1 = vld [vmem:[%s1090_s1 + $0x2c] sm:$0xf0] }
   0xc   :  { %v642_v2 = vld [vmem:[%s1090_s1 + $0x28] sm:$0xf]  ;;  %v635_v3 = vor.u32 %v819_v1, %v634_v0  ;;  %v820_v4 = vld [vmem:[%s1090_s1 + $0x34] sm:$0xf0]  ;;  %v818_v5 = vld [vmem:[%s1090_s1 + $0x2c] sm:$0xf] }
   0xd   :  { %v644_v6 = vld [vmem:[%s1090_s1 + $0x38] sm:$0xf0]  ;;  %v643_v7 = vor.u32 %v820_v4, %v642_v2  ;;  %v618_v9 = vld [vmem:[%s1090_s1] sm:$0xf]  ;;  %v815_v10 = vld [vmem:[%s1090_s1 + $0xc] sm:$0xf0] }
   0xe   :  { %v647_v8 = vor.u32 %v818_v5, %v644_v6  ;;  %v626_v11 = vld [vmem:[%s1090_s1 + $0x8] sm:$0xf]  ;;  %128 = vmatpush.bf16.msra.mxu1 %v635_v3  ;;  %v619_v12 = vor.u32 %v815_v10, %v618_v9  ;;  %v816_v13 = vld [vmem:[%s1090_s1 + $0x14] sm:$0xf0]  ;;  %v814_v14 = vld [vmem:[%s1090_s1 + $0xc] sm:$0xf] }
   0xf   :  { %v628_v15 = vld [vmem:[%s1090_s1 + $0x18] sm:$0xf0]  ;;  %154 = vmatpush.bf16.msra.mxu2 %v643_v7  ;;  %v627_v16 = vor.u32 %v816_v13, %v626_v11  ;;  %v58_v18 = vld [vmem:[%s1089_s0] sm:$0xff]  ;;  %v636_v20 = vld [vmem:[%s1090_s1 + $0x30] sm:$0xf0]  ;;  %vm118_vm0 = vcmask 261120  }
  0x10   :  { %167 = vmatpush.bf16.msra.mxu3 %v647_v8  ;;  %v631_v17 = vor.u32 %v814_v14, %v628_v15  ;;  %v817_v19 = vld [vmem:[%s1090_s1 + $0x24] sm:$0xf]  ;;  %v828_v23 = vld [vmem:[#allocation5 + $0x38] sm:$0xff]  ;;  %v59_v24 = vpack.c.bf16 %v58_v18, %v58_v18  ;;  %v620_v25 = vld [vmem:[%s1090_s1 + $0x10] sm:$0xf0]  ;;  %vm596_vm4 = vcmask 130048  }
  0x11   :  { %v639_v21 = vor.u32 %v817_v19, %v636_v20  ;;  %v813_v22 = vld [vmem:[%s1090_s1 + $0x4] sm:$0xf]  ;;  %v844_v26 = vld [vmem:[#allocation5 + $0xb8] sm:$0xff]  ;;  %442 = vmatpush.bf16.msra.mxu0 %v828_v23  ;;  %v827_v28 = vld [vmem:[#allocation5 + $0x30] sm:$0xff] }
  0x12   :  { %v852_v27 = vld [vmem:[#allocation5 + $0xf8] sm:$0xff]  ;;  %129 = vmatpush.bf16.msra.mxu1 %v619_v12  ;;  %v623_v29 = vor.u32 %v813_v22, %v620_v25  ;;  %v843_v30 = vld [vmem:[#allocation5 + $0xb0] sm:$0xff]  ;;  %v826_v33 = vld [vmem:[#allocation5 + $0x28] sm:$0xff] }
  0x13   :  { %155 = vmatpush.bf16.msra.mxu2 %v627_v16  ;;  %v851_v31 = vld [vmem:[#allocation5 + $0xf0] sm:$0xff]  ;;  %v836_v32 = vld [vmem:[#allocation5 + $0x78] sm:$0xff]  ;;  %v842_v34 = vld [vmem:[#allocation5 + $0xa8] sm:$0xff] }
  0x14   :  { %168 = vmatpush.bf16.msra.mxu3 %v631_v17  ;;  %v850_v35 = vld [vmem:[#allocation5 + $0xe8] sm:$0xff]  ;;  %v835_v36 = vld [vmem:[#allocation5 + $0x70] sm:$0xff]  ;;  %v825_v37 = vld [vmem:[#allocation5 + $0x20] sm:$0xff] }
  0x15   :  { %648 = vmatmul.msk.bf16.vlgmr.msra.gmra.mxu1 %vm118_vm0, %v59_v24  ;;  %443 = vmatpush.bf16.msra.mxu0 %v827_v28  ;;  %v841_v38 = vld [vmem:[#allocation5 + $0xa0] sm:$0xff]  ;;  %v824_v40 = vld [vmem:[#allocation5 + $0x18] sm:$0xff]  ;;  %v823_v43 = vld [vmem:[#allocation5 + $0x10] sm:$0xff] }
  0x16   :  { %141 = vmatpush.bf16.msrb.mxu1 %v639_v21  ;;  %650 = vmatmul.msk.bf16.vlgmr.msra.gmra.mxu2 %vm118_vm0, %v59_v24  ;;  %v849_v39 = vld [vmem:[#allocation5 + $0xe0] sm:$0xff]  ;;  %v840_v41 = vld [vmem:[#allocation5 + $0x98] sm:$0xff]  ;;  %v822_v44 = vld [vmem:[#allocation5 + $0x8] sm:$0xff] }
  0x17   :  { %468 = vmatpush.bf16.msrb.mxu2 %v844_v26  ;;  %651 = vmatmul.msk.bf16.vlgmr.msra.gmra.mxu3 %vm118_vm0, %v59_v24  ;;  %v848_v42 = vld [vmem:[#allocation5 + $0xd8] sm:$0xff]  ;;  %v834_v45 = vld [vmem:[#allocation5 + $0x68] sm:$0xff]  ;;  %v839_v46 = vld [vmem:[#allocation5 + $0x90] sm:$0xff] }
  0x18   :  { %481 = vmatpush.bf16.msrb.mxu3 %v852_v27  ;;  %v847_v47 = vld [vmem:[#allocation5 + $0xd0] sm:$0xff]  ;;  %v821_v48 = vld [vmem:[#allocation5] sm:$0xff]  ;;  %v838_v50 = vld [vmem:[#allocation5 + $0x88] sm:$0xff] }
  0x19   :  { %444 = vmatpush.bf16.msra.mxu0 %v826_v33  ;;  %v833_v49 = vld [vmem:[#allocation5 + $0x60] sm:$0xff]  ;;  %v846_v51 = vld [vmem:[#allocation5 + $0xc8] sm:$0xff]  ;;  %v832_v52 = vld [vmem:[#allocation5 + $0x58] sm:$0xff] }
  0x1a   :  { %142 = vmatpush.bf16.msrb.mxu1 %v623_v29  ;;  %v837_v53 = vld [vmem:[#allocation5 + $0x80] sm:$0xff]  ;;  %v831_v55 = vld [vmem:[#allocation5 + $0x50] sm:$0xff]  ;;  %v830_v56 = vld [vmem:[#allocation5 + $0x48] sm:$0xff] }
  0x1b   :  { %469 = vmatpush.bf16.msrb.mxu2 %v843_v30  ;;  %v845_v54 = vld [vmem:[#allocation5 + $0xc0] sm:$0xff]  ;;  %v860_v58 = vld [vmem:[%s1094_s5 + $0x38] sm:$0xff]  ;;  %v68_v59 = vld [vmem:[#allocation2] sm:$0xf] }
  0x1c   :  { %482 = vmatpush.bf16.msrb.mxu3 %v851_v31  ;;  %v829_v57 = vld [vmem:[#allocation5 + $0x40] sm:$0xff]  ;;  %v70_v60 = vperm.slane %v68_v59, 0  ;;  %v72_v0 = vperm.slane %v68_v59, 2  ;;  %v73_v1 = vperm.slane %v68_v59, 3  ;;  %v71_v12 = vperm.slane %v68_v59, 1  ;;  %v859_v20 = vld [vmem:[%s1094_s5 + $0x30] sm:$0xff] }
  0x1d   :  { %445 = vmatpush.bf16.msra.mxu0 %v825_v37  ;;  %v858_v21 = vld [vmem:[%s1094_s5 + $0x28] sm:$0xff]  ;;  %v857_v22 = vld [vmem:[%s1094_s5 + $0x20] sm:$0xff]  ;;  %v856_v23 = vld [vmem:[%s1094_s5 + $0x18] sm:$0xff] }
  0x1e   :  { %455 = vmatpush.bf16.msra.mxu1 %v836_v32  ;;  %v854_v25 = vld [vmem:[%s1094_s5 + $0x8] sm:$0xff]  ;;  %v853_v26 = vld [vmem:[%s1094_s5] sm:$0xff] }
  0x1f   :  { %470 = vmatpush.bf16.msrb.mxu2 %v842_v34  ;;  %v866_v29 = vld [vmem:[%s1093_s4] ss:$0 sm:$0xff]  ;;  %s954_s4 = smov [#allocation7]  }
  0x20   :  { %483 = vmatpush.bf16.msrb.mxu3 %v850_v35  ;;  %s603_s13 = sshll.u32 %s954_s4, 4  ;;  %s604_s13 = int_to_ptr.vmem [resolvable:$true] %s603_s13 }
  0x21   :  { %446 = vmatpush.bf16.msra.mxu0 %v824_v40 }
  0x22   :  { %456 = vmatpush.bf16.msra.mxu1 %v835_v36 }
  0x23   :  { %471 = vmatpush.bf16.msrb.mxu2 %v841_v38 }
  0x24   :  { %484 = vmatpush.bf16.msrb.mxu3 %v849_v39 }
  0x25   :  { %649 = vmatmul.msk.bf16.vlgmr.msrb.gmra.mxu1 %vm118_vm0, %v59_v24  ;;  %447 = vmatpush.bf16.msra.mxu0 %v823_v43  ;;  %v855_v24 = vld [vmem:[%s1094_s5 + $0x10] sm:$0xff] }
  0x26   :  { %457 = vmatpush.bf16.msra.mxu1 %v834_v45 }
  0x27   :  { %472 = vmatpush.bf16.msrb.mxu2 %v840_v41 }
  0x28   :  { %485 = vmatpush.bf16.msrb.mxu3 %v848_v42  ;;  %v867_v42 = vld [vmem:[%s1095_s6] ss:$0 sm:$0xff]  ;;  %s605_s6 = sshll.u32 %s1096_s7, 4  ;;  %s606_s6 = int_to_ptr.hbm [resolvable:$true] %s605_s6 }
  0x29   :  { %448 = vmatpush.bf16.msra.mxu0 %v822_v44 }
  0x2a   :  { %458 = vmatpush.bf16.msra.mxu1 %v833_v49 }
  0x2b   :  { %473 = vmatpush.bf16.msrb.mxu2 %v839_v46 }
  0x2c   :  { %486 = vmatpush.bf16.msrb.mxu3 %v847_v47 }
  0x2d   :  { %449 = vmatpush.bf16.msra.mxu0 %v821_v48 }
  0x2e   :  { %459 = vmatpush.bf16.msra.mxu1 %v832_v52 }
  0x2f   :  { %474 = vmatpush.bf16.msrb.mxu2 %v838_v50 }
  0x30   :  { %487 = vmatpush.bf16.msrb.mxu3 %v846_v51 }
  0x31   :  { %564 = vmatpush.bf16.msrb.mxu0 %v860_v58 }
  0x32   :  { %460 = vmatpush.bf16.msra.mxu1 %v831_v55 }
  0x33   :  { %475 = vmatpush.bf16.msrb.mxu2 %v837_v53 }
  0x34   :  { %488 = vmatpush.bf16.msrb.mxu3 %v845_v54 }
  0x35   :  { %565 = vmatpush.bf16.msrb.mxu0 %v859_v20 }
  0x36   :  { %461 = vmatpush.bf16.msra.mxu1 %v830_v56 }
  0x39   :  { %566 = vmatpush.bf16.msrb.mxu0 %v858_v21 }
  0x3a   :  { %462 = vmatpush.bf16.msra.mxu1 %v829_v57 }
  0x3d   :  { %567 = vmatpush.bf16.msrb.mxu0 %v857_v22 }
  0x41   :  { %568 = vmatpush.bf16.msrb.mxu0 %v856_v23 }
  0x45   :  { %569 = vmatpush.bf16.msrb.mxu0 %v855_v24 }
  0x49   :  { %570 = vmatpush.bf16.msrb.mxu0 %v854_v25 }
  0x4d   :  { %571 = vmatpush.bf16.msrb.mxu0 %v853_v26 }
  0x92   :  { %v131_v61 = vpop.f32.mrf.mxu1 }
  0x93   :  { %v132_v62 = vadd.f32 %v131_v61, %v70_v60 }
  0x95   :  { %v174_v63 = vmax.f32 %v132_v62, 0.0 }
  0x97   :  { %v178_v2 = vpack.c.bf16 %v174_v63, %v174_v63 }
  0x99   :  { %v157_v3 = vpop.f32.mrf.mxu2  ;;  %450 = vmatmul.bf16.vlgmr.msra.gmra.mxu0 %v178_v2 }
  0x9a   :  { %v170_v4 = vpop.f32.mrf.mxu3  ;;  %v158_v5 = vadd.f32 %v157_v3, %v72_v0  ;;  %v133_v7 = vpop.f32.mrf.mxu1 }
  0x9b   :  { %v171_v6 = vadd.f32 %v170_v4, %v73_v1 }
  0x9c   :  { %v176_v8 = vmax.f32 %v158_v5, 0.0 }
  0x9d   :  { %v177_v9 = vmax.f32 %v171_v6, 0.0 }
  0x9e   :  { %v180_v10 = vpack.c.bf16 %v176_v8, %v176_v8 }
  0x9f   :  { %v181_v11 = vpack.c.bf16 %v177_v9, %v177_v9 }
  0xa0   :  { %476 = vmatmul.bf16.vlgmr.msrb.gmra.mxu2 %v180_v10 }
  0xa1   :  { %489 = vmatmul.bf16.vlgmr.msrb.gmra.mxu3 %v181_v11  ;;  %v159_v13 = vpop.f32.mrf.mxu2 }
  0xa2   :  { %v172_v14 = vpop.f32.mrf.mxu3  ;;  %v144_v15 = vpop.f32.mrf.mxu1 }
  0xa3   :  { %v145_v16 = vadd.f32 %v144_v15, %v71_v12 }
  0xa5   :  { %v175_v17 = vmax.f32 %v145_v16, 0.0 }
  0xa7   :  { %v179_v18 = vpack.c.bf16 %v175_v17, %v175_v17 }
  0xa9   :  { %463 = vmatmul.bf16.vlgmr.msra.gmra.mxu1 %v179_v18 }
  0xaa   :  { %v146_v19 = vpop.f32.mrf.mxu1 }
 0x116   :  { %v451_v27 = vpop.f32.mrf.mxu0 }
 0x117   :  { %v452_v32 = vadd.f32 %v866_v29, %v451_v27 }
 0x11e   :  { %v453_v28 = vpop.f32.mrf.mxu0 }
 0x123   :  { %v477_v30 = vpop.f32.mrf.mxu2 }
 0x124   :  { %v490_v31 = vpop.f32.mrf.mxu3 }
 0x126   :  { %v464_v33 = vpop.f32.mrf.mxu1 }
 0x127   :  { %v465_v34 = vadd.f32 %v464_v33, %v452_v32 }
 0x129   :  { %v478_v35 = vadd.f32 %v477_v30, %v465_v34 }
 0x12b   :  { %v491_v36 = vadd.f32 %v490_v31, %v478_v35  ;;  %v479_v37 = vpop.f32.mrf.mxu2 }
 0x12c   :  { %v492_v38 = vpop.f32.mrf.mxu3 }
 0x12d   :  { %v494_v39 = vmax.f32 %v491_v36, 0.0 }
 0x12e   :  { %v466_v40 = vpop.f32.mrf.mxu1 }
 0x12f   :  { %v495_v41 = vpack.c.bf16 %v494_v39, %v494_v39 }
 0x131   :  { %572 = vmatmul.bf16.vlgmr.msrb.gmra.mxu0 %v495_v41 }
 0x1ae   :  { %v573_v43 = vpop.f32.mrf.mxu0 }
 0x1af   :  { %v574_v44 = vadd.f32 %v867_v42, %v573_v43 }
 0x1b1   :  { %v812_v45 = vmul.f32 -1.442695, %v574_v44 }
 0x1b3   :  { %868 = vpow2.f32 %v812_v45 }
 0x1b6   :  { %v575_v46 = vpop.f32.mrf.mxu0 }
 0x1b9   :  { %v869_v47 = vpop.eup %868 }
 0x1ba   :  { %v580_v48 = vadd.f32 1.0, %v869_v47 }
 0x1bc   :  { %870 = vrcp.f32 %v580_v48  ;;  %v592_v52 = vand.u32 2147483648, %v580_v48  ;;  %v590_v54 = vand.u32 2147483647, %v580_v48  ;;  %vm586_vm2 = vweird.f32 %v580_v48 }
 0x1be   :  { %v593_v56 = vor.u32 1.1754944e-38, %v592_v52  ;;  %vm591_vm5 = vcmp.eq.f32.partialorder %v590_v54, 8.507059e+37 }
 0x1c2   :  { %v871_v49 = vpop.eup %870 }
 0x1c3   :  { %v582_v50 = vmul.f32 %v871_v49, %v580_v48  ;;  %vm587_vm1 = vweird.f32 %v871_v49 }
 0x1c4   :  { %vm588_vm3 = vmor %vm586_vm2, %vm587_vm1 }
 0x1c5   :  { %v583_v51 = vsub.f32 1.0, %v582_v50 }
 0x1c7   :  { %v584_v53 = vmul.f32 %v871_v49, %v583_v51 }
 0x1c9   :  { %v585_v55 = vadd.f32 %v871_v49, %v584_v53 }
 0x1cb   :  { %v589_v57 = vsel %vm588_vm3, %v871_v49, %v585_v55 }
 0x1cc   :  { %v594_v58 = vsel %vm591_vm5, %v593_v56, %v589_v57 }
 0x1cd   :  { %597 = vst.msk [vmem:[#allocation7] sm:$0xff] %vm596_vm4, %v594_v58 }
 0x1ce   :  { %608 = dma.vmem_to_hbm [thread:$0]  %s604_s13, 128, %s606_s6, [#allocation4]  }
 0x1cf   :  { %948 = dma.done.wait [#allocation4], 128  }
 0x1d0   :  { %949 = vsyncadd [#allocation4], 4294967168 }
 0x1d1   :  { %613 = vsyncpa [#allocation3], 1 }
 0x1d2   :  { %614 = vsyncpa [#allocation6], 1 }
 0x1d3   :  { %615 = vsyncpa [#allocation4], 1 }

</bundles_post_ra>
